<compile_context>
chip_gen: v7x
topology: tpu7x:2x2x1
jax: 0.10.0
libtpu: 0.0.40
codegen_flags: <defaults>
</compile_context>

<pallas_src>
import functools

import jax
import jax.numpy as jnp
from jax.experimental import pallas as pl
from jax.experimental.pallas import tpu as pltpu


def _round_up(x, m):
    return ((x + m - 1) // m) * m


def _make_critic_kernel(depth, lane_dense):
    """Kernel for an MLP Critic: `depth` ReLU'd layers + final H->1 head.

    Ref order:
      sa,                             # streamed (tb, S+A) bf16 tile
      w0, b0,                         # layer 0: (S+A, H) bf16 / (1, H) f32
      (w_k, b_k) * (depth - 1),       # hidden layers: (H, H) bf16 / (1, H) f32
      w_last, b_last,                 # final head: (H,1) or (1,H) f32, (1,1) f32
      out                             # (1, tb) if lane_dense else (tb, 1)
    """

    def kernel(sa_ref, *refs):
        out_ref = refs[-1]
        p = refs[:-1]

        # ---- layer 0: single fused bf16 MXU matmul (concat done wrapper-side) ----
        h = jnp.dot(sa_ref[...], p[0][...],
                    preferred_element_type=jnp.float32) + p[1][...]
        h = jnp.maximum(h, 0.0)

        # ---- hidden layers 1 .. depth-1 ----
        idx = 2
        for _ in range(depth - 1):
            w = p[idx][...]
            b = p[idx + 1][...]
            idx += 2
            h = jnp.dot(h.astype(jnp.bfloat16), w,
                        preferred_element_type=jnp.float32) + b
            h = jnp.maximum(h, 0.0)

        # ---- final H -> 1 head (no N=1 MXU pass) ----
        w_last = p[idx][...]
        b_last = p[idx + 1][...]
        if lane_dense:
            # Transpose h (XLU slot is idle), multiply by the (H, 1) weight
            # column and sublane-reduce -> lane-dense (1, tb) output row.
            q = jnp.sum(h.T * w_last, axis=0, keepdims=True) + b_last   # (1, tb)
        else:
            # Fallback: VPU multiply by the (1, H) row + lane reduce -> (tb, 1).
            q = jnp.sum(h * w_last, axis=-1, keepdims=True) + b_last
        out_ref[...] = q.astype(out_ref.dtype)

    return kernel


def _prep_kernel_params(params, lane_dense):
    """Flatten params: bf16 MXU weights, f32 biases, final head reshaped."""
    flat = []
    w0, b0 = params[0]
    flat.append(w0.astype(jnp.bfloat16))                          # (S+A, H)
    flat.append(b0.reshape(1, -1).astype(jnp.float32))            # (1, H)
    for (w, b) in params[1:-1]:
        flat.append(w.astype(jnp.bfloat16))                       # (H, H)
        flat.append(b.reshape(1, -1).astype(jnp.float32))         # (1, H)
    w_last, b_last = params[-1]
    if lane_dense:
        flat.append(w_last.reshape(-1, 1).astype(jnp.float32))    # (H, 1)
    else:
        flat.append(w_last.reshape(1, -1).astype(jnp.float32))    # (1, H)
    flat.append(b_last.reshape(1, 1).astype(jnp.float32))         # (1, 1)
    return flat


@functools.partial(jax.jit, static_argnames=("block_batch",))
def critic_forward(state, action, params, *, block_batch=512):
    """Pallas-backed Critic forward.

    state:  [B, state_dim]  float32
    action: [B, action_dim] float32
    params: list of (W, b) with W: [in, out] f32, b: [1, out] f32
    returns: [B, 1] float32
    """
    B, S = state.shape
    A = action.shape[1]
    SA = S + A
    depth = len(params) - 1            # number of ReLU'd layers
    H = params[0][0].shape[1]

    # Lane-dense (1, B) output layout needs 128-aligned batch tiles.
    lane_dense = (H % 128 == 0)
    align = 128 if lane_dense else 8

    # Batch tile: rounded to alignment; force >= 2 grid steps when the batch
    # allows it so the "parallel" axis shards across both v7x TensorCores.
    tb = _round_up(max(1, min(block_batch, B)), align)
    num_tiles = pl.cdiv(B, tb)
    if num_tiles == 1 and B > align:
        tb = _round_up(pl.cdiv(B, 2), align)
        num_tiles = pl.cdiv(B, tb)
    padded_b = num_tiles * tb

    # Fused concat + bf16 cast in XLA: stream a single (tb, S+A) bf16 tile.
    sa = jnp.concatenate([state, action], axis=1).astype(jnp.bfloat16)
    if padded_b != B:
        sa = jnp.pad(sa, ((0, padded_b - B), (0, 0)))

    flat = _prep_kernel_params(params, lane_dense)
    kernel = _make_critic_kernel(depth, lane_dense)

    def resident(x):
        # Full-array block with a constant index_map -> DMA'd once, stays
        # VMEM-resident; single-buffered since the block never changes.
        return pl.BlockSpec(x.shape, lambda i: (0, 0),
                            pipeline_mode=pl.Buffered(1))

    in_specs = ([pl.BlockSpec((tb, SA), lambda i: (i, 0))]     # streamed sa tile
                + [resident(x) for x in flat])                 # resident params

    if lane_dense:
        out_shape = jax.ShapeDtypeStruct((1, padded_b), jnp.float32)
        out_spec = pl.BlockSpec((1, tb), lambda i: (0, i))
    else:
        out_shape = jax.ShapeDtypeStruct((padded_b, 1), jnp.float32)
        out_spec = pl.BlockSpec((tb, 1), lambda i: (i, 0))

    # Size-derived VMEM limit (resident params + double-buffered streamed tiles
    # + activations) with ~25% headroom, clamped to a range safe on v5e/v6e/v7x.
    resident_bytes = sum(int(x.size) * x.dtype.itemsize for x in flat)
    stream_bytes = 2 * (tb * SA * 2 + tb * 4)
    act_bytes = 3 * tb * H * 4
    vmem_needed = resident_bytes + stream_bytes + act_bytes
    vmem_limit = int(min(max(int(vmem_needed * 1.25), 32 * 1024 * 1024),
                         60 * 1024 * 1024))

    flops = 2 * padded_b * (SA * H + (depth - 1) * H * H + H)
    bytes_accessed = int(padded_b * SA * 2 + padded_b * 4 + resident_bytes)

    out = pl.pallas_call(
        kernel,
        out_shape=out_shape,
        grid_spec=pltpu.PrefetchScalarGridSpec(
            num_scalar_prefetch=0,
            grid=(num_tiles,),
            in_specs=in_specs,
            out_specs=out_spec,
        ),
        compiler_params=pltpu.CompilerParams(
            dimension_semantics=("parallel",),
            vmem_limit_bytes=vmem_limit,
        ),
        cost_estimate=pl.CostEstimate(
            flops=flops, transcendentals=0, bytes_accessed=bytes_accessed),
    )(sa, *flat)

    if lane_dense:
        out = out.reshape(padded_b, 1)
    if padded_b != B:
        out = out[:B]
    return out


def init_critic_params(key, state_dim, action_dim, depth=2, num_neurons=512):
    """Deterministic init mirroring nn.Linear default (uniform +-1/sqrt(fan_in)).

    Weights stored as [in, out] (transpose of PyTorch's [out, in])."""
    dims_in = [state_dim + action_dim] + [num_neurons] * (depth - 1) + [num_neurons]
    dims_out = [num_neurons] * depth + [1]
    params = []
    for din, dout in zip(dims_in, dims_out):
        key, kw, kb = jax.random.split(key, 3)
        bound = 1.0 / jnp.sqrt(jnp.float32(din))
        w = jax.random.uniform(kw, (din, dout), jnp.float32, -bound, bound)
        b = jax.random.uniform(kb, (1, dout), jnp.float32, -bound, bound)
        params.append((w, b))
    return params


def critic_forward_ref(state, action, params):
    """Plain-JAX reference matching the kernel numerics
    (bf16 matmul inputs, f32 accumulation, f32 final head)."""
    h = jnp.concatenate([state, action], axis=1)
    for k, (w, b) in enumerate(params):
        if k < len(params) - 1:
            h = jnp.dot(h.astype(jnp.bfloat16), w.astype(jnp.bfloat16),
                        preferred_element_type=jnp.float32) + b.reshape(1, -1)
            h = jnp.maximum(h, 0.0)
        else:
            h = h @ w + b.reshape(1, -1)
    return h


if __name__ == "__main__":
    # Small shapes consistent with the module (hidden width kept MXU/lane-aligned).
    batch = 256
    state_dim = 12
    action_dim = 4
    depth = 2
    num_neurons = 256   # module default is 512; 256 keeps the demo small + aligned

    key = jax.random.PRNGKey(0)
    key, ks, ka, kp = jax.random.split(key, 4)
    state = jax.random.normal(ks, (batch, state_dim), jnp.float32)
    action = jax.random.normal(ka, (batch, action_dim), jnp.float32)
    params = init_critic_params(kp, state_dim, action_dim, depth, num_neurons)

    out = critic_forward(state, action, params)
    out = jax.block_until_ready(out)

    ref = critic_forward_ref(state, action, params)
    assert out.shape == (batch, 1), out.shape
    max_err = float(jnp.max(jnp.abs(out - ref)))
    assert jnp.allclose(out, ref, atol=3e-3, rtol=3e-3), max_err

    print("KERNEL_OK")
</pallas_src>

<mosaic_0001>
module attributes {stable_mosaic.version = 11 : i64} {
  func.func @kernel(%arg0: i32, %arg1: memref<128x16xbf16, #tpu.memory_space<vmem>>, %arg2: memref<16x256xbf16, #tpu.memory_space<vmem>>, %arg3: memref<1x256xf32, #tpu.memory_space<vmem>>, %arg4: memref<256x256xbf16, #tpu.memory_space<vmem>>, %arg5: memref<1x256xf32, #tpu.memory_space<vmem>>, %arg6: memref<256x1xf32, #tpu.memory_space<vmem>>, %arg7: memref<1x1xf32, #tpu.memory_space<vmem>>, %arg8: memref<1x128xf32, #tpu.memory_space<vmem>>) attributes {dimension_semantics = [#tpu.dimension_semantics<parallel>], iteration_bounds = array<i64: 2>, scalar_prefetch = 0 : i64, scratch_operands = 0 : i64, tpu.core_type = #tpu.core_type<tc>, window_params = [{transform_indices = @transform_0, window_bounds = array<i64: 128, 16>}, {pipeline_mode = #tpu.pipeline_mode<synchronous>, transform_indices = @transform_1, window_bounds = array<i64: 16, 256>}, {pipeline_mode = #tpu.pipeline_mode<synchronous>, transform_indices = @transform_2, window_bounds = array<i64: 1, 256>}, {pipeline_mode = #tpu.pipeline_mode<synchronous>, transform_indices = @transform_3, window_bounds = array<i64: 256, 256>}, {pipeline_mode = #tpu.pipeline_mode<synchronous>, transform_indices = @transform_4, window_bounds = array<i64: 1, 256>}, {pipeline_mode = #tpu.pipeline_mode<synchronous>, transform_indices = @transform_5, window_bounds = array<i64: 256, 1>}, {pipeline_mode = #tpu.pipeline_mode<synchronous>, transform_indices = @transform_6, window_bounds = array<i64: 1, 1>}, {transform_indices = @transform_7, window_bounds = array<i64: 1, 128>}]} {
    %c0 = arith.constant 0 : index
    %c0_0 = arith.constant 0 : index
    %0 = vector.load %arg1[%c0, %c0_0] : memref<128x16xbf16, #tpu.memory_space<vmem>>, vector<128x16xbf16>
    %c0_1 = arith.constant 0 : index
    %c0_2 = arith.constant 0 : index
    %1 = vector.load %arg2[%c0_1, %c0_2] : memref<16x256xbf16, #tpu.memory_space<vmem>>, vector<16x256xbf16>
    %cst = arith.constant dense<0.000000e+00> : vector<128x256xf32>
    %2 = tpu.matmul %0, %1, %cst {dimension_numbers = #tpu.dot_dimension_numbers<[1], [0], [0], [1], [0, 0, 1, 1], [], []>} : vector<128x16xbf16>, vector<16x256xbf16>, vector<128x256xf32> -> vector<128x256xf32>
    %c0_3 = arith.constant 0 : index
    %c0_4 = arith.constant 0 : index
    %3 = vector.load %arg3[%c0_3, %c0_4] : memref<1x256xf32, #tpu.memory_space<vmem>>, vector<1x256xf32>
    %4 = vector.broadcast %3 : vector<1x256xf32> to vector<128x256xf32>
    %5 = arith.addf %2, %4 : vector<128x256xf32>
    %cst_5 = arith.constant 0.000000e+00 : f32
    %6 = vector.broadcast %cst_5 : f32 to vector<128x256xf32>
    %7 = arith.maximumf %5, %6 : vector<128x256xf32>
    %c0_6 = arith.constant 0 : index
    %c0_7 = arith.constant 0 : index
    %8 = vector.load %arg4[%c0_6, %c0_7] : memref<256x256xbf16, #tpu.memory_space<vmem>>, vector<256x256xbf16>
    %c0_8 = arith.constant 0 : index
    %c0_9 = arith.constant 0 : index
    %9 = vector.load %arg5[%c0_8, %c0_9] : memref<1x256xf32, #tpu.memory_space<vmem>>, vector<1x256xf32>
    %10 = arith.truncf %7 : vector<128x256xf32> to vector<128x256xbf16>
    %cst_10 = arith.constant dense<0.000000e+00> : vector<128x256xf32>
    %11 = tpu.matmul %10, %8, %cst_10 {dimension_numbers = #tpu.dot_dimension_numbers<[1], [0], [0], [1], [0, 0, 1, 1], [], []>} : vector<128x256xbf16>, vector<256x256xbf16>, vector<128x256xf32> -> vector<128x256xf32>
    %12 = vector.broadcast %9 : vector<1x256xf32> to vector<128x256xf32>
    %13 = arith.addf %11, %12 : vector<128x256xf32>
    %cst_11 = arith.constant 0.000000e+00 : f32
    %14 = vector.broadcast %cst_11 : f32 to vector<128x256xf32>
    %15 = arith.maximumf %13, %14 : vector<128x256xf32>
    %c0_12 = arith.constant 0 : index
    %c0_13 = arith.constant 0 : index
    %16 = vector.load %arg6[%c0_12, %c0_13] : memref<256x1xf32, #tpu.memory_space<vmem>>, vector<256x1xf32>
    %c0_14 = arith.constant 0 : index
    %c0_15 = arith.constant 0 : index
    %17 = vector.load %arg7[%c0_14, %c0_15] : memref<1x1xf32, #tpu.memory_space<vmem>>, vector<1x1xf32>
    %18 = tpu.transpose %15, [1, 0] : vector<128x256xf32> -> vector<256x128xf32>
    %19 = vector.broadcast %16 : vector<256x1xf32> to vector<256x128xf32>
    %20 = arith.mulf %18, %19 : vector<256x128xf32>
    %cst_16 = arith.constant dense<0.000000e+00> : vector<128xf32>
    %21 = vector.multi_reduction <add>, %20, %cst_16 [0] : vector<256x128xf32> to vector<128xf32>
    %22 = vector.shape_cast %21 : vector<128xf32> to vector<1x128xf32>
    %23 = vector.broadcast %17 : vector<1x1xf32> to vector<1x128xf32>
    %24 = arith.addf %22, %23 : vector<1x128xf32>
    %c0_17 = arith.constant 0 : index
    %c0_18 = arith.constant 0 : index
    %25 = vector.load %arg8[%c0_17, %c0_18] : memref<1x128xf32, #tpu.memory_space<vmem>>, vector<1x128xf32>
    tpu.vector_store %arg8[%c0_17, %c0_18], %24 {strides = array<i32>} : memref<1x128xf32, #tpu.memory_space<vmem>>, vector<1x128xf32>,
    return
  }
  func.func @transform_0(%arg0: i32) -> (i32, i32) {
    %c0_i32 = arith.constant 0 : i32
    %c0_i32_0 = arith.constant 0 : i32
    return %arg0, %c0_i32 : i32, i32
  }
  func.func @transform_1(%arg0: i32) -> (i32, i32) {
    %c0_i32 = arith.constant 0 : i32
    %c0_i32_0 = arith.constant 0 : i32
    %c0_i32_1 = arith.constant 0 : i32
    return %c0_i32, %c0_i32_0 : i32, i32
  }
  func.func @transform_2(%arg0: i32) -> (i32, i32) {
    %c0_i32 = arith.constant 0 : i32
    %c0_i32_0 = arith.constant 0 : i32
    %c0_i32_1 = arith.constant 0 : i32
    return %c0_i32, %c0_i32_0 : i32, i32
  }
  func.func @transform_3(%arg0: i32) -> (i32, i32) {
    %c0_i32 = arith.constant 0 : i32
    %c0_i32_0 = arith.constant 0 : i32
    %c0_i32_1 = arith.constant 0 : i32
    return %c0_i32, %c0_i32_0 : i32, i32
  }
  func.func @transform_4(%arg0: i32) -> (i32, i32) {
    %c0_i32 = arith.constant 0 : i32
    %c0_i32_0 = arith.constant 0 : i32
    %c0_i32_1 = arith.constant 0 : i32
    return %c0_i32, %c0_i32_0 : i32, i32
  }
  func.func @transform_5(%arg0: i32) -> (i32, i32) {
    %c0_i32 = arith.constant 0 : i32
    %c0_i32_0 = arith.constant 0 : i32
    %c0_i32_1 = arith.constant 0 : i32
    return %c0_i32, %c0_i32_0 : i32, i32
  }
  func.func @transform_6(%arg0: i32) -> (i32, i32) {
    %c0_i32 = arith.constant 0 : i32
    %c0_i32_0 = arith.constant 0 : i32
    %c0_i32_1 = arith.constant 0 : i32
    return %c0_i32, %c0_i32_0 : i32, i32
  }
  func.func @transform_7(%arg0: i32) -> (i32, i32) {
    %c0_i32 = arith.constant 0 : i32
    %c0_i32_0 = arith.constant 0 : i32
    return %c0_i32, %arg0 : i32, i32
  }
}

</mosaic_0001>

<bundles_post_ra>
// kernel: critic_forward.1
= control target key start
LH: loop header
LB: loop body
LE: loop exit
PB: predicated region body
PF: predicated region fallthrough
CT: control target
= control target key end

     0   :  { %s2096_s0 = inlined_call_operand.vmem [shape: bf16[256,16], index: 0, kind: input, shape index: {}]   ;;  %s2097_s1 = inlined_call_operand.vmem [shape: bf16[16,256], index: 1, kind: input, shape index: {}]   ;;  %s2098_s2 = inlined_call_operand.vmem [shape: f32[1,256], index: 2, kind: input, shape index: {}]   ;;  %s2099_s3 = inlined_call_operand.vmem [shape: bf16[256,256], index: 3, kind: input, shape index: {}]   ;;  %s2100_s4 = inlined_call_operand.vmem [shape: f32[1,256], index: 4, kind: input, shape index: {}]   ;;  %s2101_s5 = inlined_call_operand.vmem [shape: f32[256,1], index: 5, kind: input, shape index: {}]   ;;  %s2102_s6 = inlined_call_operand.<no memory space> [shape: f32[1,1], index: 6, kind: input, shape index: {}]   ;;  %s2103_s7 = inlined_call_operand.hbm [shape: f32[1,256], index: 7, kind: output, shape index: {}]  }
   0x1   :  { %v12_v0 = vstv %s2102_s6 }
   0x2   :  { %13 = vst [vmem:[#allocation2] sm:$0x1] %v12_v0 }
   0x3   :  { %14 = vsyncpa [#allocation4], 0 }
   0x4   :  { %16 = vsyncpa [#allocation4 + $0x1], 0  ;;  %s1602_s26 = smov 0   ;;  %s1604_s27 = smov 0  }
   0x5   :  { %s1606_s28 = smov 0   ;;  %s1608_s29 = smov 0  }
   0x6 LB: > { %s1300_s6 = sadd.s32 4294967295, %s1555_s29   ;;  %s1301_s30 = sadd.s32 4294967294, %s1555_s29   ;;  %s1555_s29 = sphi %s1608_s29, %s2109_s29   ;;  %s1551_s28 = sphi %s1606_s28, %s2108_s28   ;;  %s1547_s27 = sphi %s1604_s27, %s2107_s27   ;;  %s1543_s26 = sphi %s1602_s26, %s2106_s26  }
   0x7   : > { %s1625_s8 = sadd.s32 1, %s1555_s29   ;;  %s181_s9 = sadd.s32 1, %s1551_s28 }
   0x8   : > { %s178_s10 = ssub.s32 %s1555_s29, %s1625_s8  ;;  %p191_p0 = scmp.ne.s32.totalorder %s1551_s28, %s1547_s27 }
   0x9   : > { %p179_p1 = scmp.eq.s32.totalorder %s178_s10, 0  ;;  %p192_p2 = scmp.eq.s32.totalorder %s1300_s6, 1 }
   0xa   : > { %p197_p3 = scmp.ne.s32.totalorder %s1547_s27, %s1543_s26  ;;  %p198_p4 = scmp.eq.s32.totalorder %s1301_s30, 1 }
   0xb   : > { %s1635_s11 = scalar_select %p179_p1, %s1551_s28, %s181_s9  }
   0xc   : > { %p1637_p5 = por %p192_p2, %p191_p0  ;;  %p1641_p6 = por %p198_p4, %p197_p3 }
   0xd   : > { %p1304_p7 = scmp.ge.s32.totalorder %s1555_s29, 1  ;;  %p243_p8 = scmp.lt.s32.totalorder %s1555_s29, 3 }
   0xf   : > { %p244_p9 = pnand %p1304_p7, %p243_p8 }
  0x10   : > { %v1434_v1 = vld [vmem:[%s2097_s1 + $0x4] ss:$8 sps:$4 sm:$0xff] (!%p244_p9)   ;;  %s1650_s16 = sshll.u32 (!%p244_p9), %s1300_s6, 4  ;;  %v1436_v2 = vld [vmem:[%s2097_s1] ss:$8 sps:$4 sm:$0xff] (!%p244_p9)   ;;  %v1557_v3 = vmov (!%p244_p9), 0  }
  0x11   : > { %247 = sbr.rel (%p244_p9) target bundleno = 728 (0x2d8), region = 48  ;;  %418 = vmatprep.mubr.bf16.mxu0 (!%p244_p9), %v1557_v3  ;;  %p275_p10 = scmp.lt.s32.totalorder (!%p244_p9), %s1650_s16, 31  ;;  %1433 = vset.pattern.permute.xlu1 (!%p244_p9), %v1557_v3  ;;  %v1447_v4 = vld [vmem:[%s2099_s3 + $0x4] ss:$8 sps:$4 sm:$0xff] (!%p244_p9)   ;;  %v1445_v5 = vld [vmem:[%s2099_s3] ss:$8 sps:$4 sm:$0xff] (!%p244_p9)  }
  0x12   : > { %386 = vmatprep.subr.bf16.mxu0 (!%p244_p9), %v1434_v1  ;;  %1432 = vset.pattern.permute.xlu0 (!%p244_p9), %v1557_v3  ;;  %v1450_v6 = vld [vmem:[%s2099_s3 + $0x14] ss:$8 sps:$4 sm:$0xff] (!%p244_p9)   ;;  %vm361_vm0 = vcmask (!%p244_p9), 130048   ;;  %v1448_v7 = vld [vmem:[%s2099_s3 + $0x10] ss:$8 sps:$4 sm:$0xff] (!%p244_p9)   ;;  %v897_v44 = vld [vmem:[%s2101_s5 + $0x8] sm:$0xff] (!%p244_p9) }
  0x13   : > { %387 = vmatpush1.bf16.msra.mxu0 (!%p244_p9), %v1436_v2  ;;  %1360 = vmatprep.subr.bf16.mxu1 (!%p244_p9), %v1447_v4  ;;  %v1453_v9 = vld [vmem:[%s2099_s3 + $0x24] ss:$8 sps:$4 sm:$0xff] (!%p244_p9)   ;;  %v1451_v10 = vld [vmem:[%s2099_s3 + $0x20] ss:$8 sps:$4 sm:$0xff] (!%p244_p9)   ;;  %v1456_v11 = vld [vmem:[%s2099_s3 + $0x34] ss:$8 sps:$4 sm:$0xff] (!%p244_p9)  }
  0x14   : > { %751 = vmatprep.subr.bf16.mxu0 (!%p244_p9), %v1447_v4  ;;  %1376 = vmatpush1.bf16.msra.mxu1 (!%p244_p9), %v1445_v5  ;;  %v1454_v13 = vld [vmem:[%s2099_s3 + $0x30] ss:$8 sps:$4 sm:$0xff] (!%p244_p9)   ;;  %v1459_v14 = vld [vmem:[%s2099_s3 + $0x44] ss:$8 sps:$4 sm:$0xff] (!%p244_p9)   ;;  %v1457_v15 = vld [vmem:[%s2099_s3 + $0x40] ss:$8 sps:$4 sm:$0xff] (!%p244_p9)   ;;  %v301_v4 = vlaneseq (!%p244_p9) }
  0x15   : > { %1361 = vmatprep.subr.bf16.mxu1 (!%p244_p9), %v1450_v6  ;;  %v1462_v16 = vld [vmem:[%s2099_s3 + $0x54] ss:$8 sps:$4 sm:$0xff] (!%p244_p9)   ;;  %v1460_v18 = vld [vmem:[%s2099_s3 + $0x50] ss:$8 sps:$4 sm:$0xff] (!%p244_p9)   ;;  %v1465_v19 = vld [vmem:[%s2099_s3 + $0x64] ss:$8 sps:$4 sm:$0xff] (!%p244_p9)   ;;  %1000 = vperm.xlu1 (!%p244_p9), %1433, %v897_v44  }
  0x16   : > { %v1463_v20 = vld [vmem:[%s2099_s3 + $0x60] ss:$8 sps:$4 sm:$0xff] (!%p244_p9)   ;;  %v1468_v21 = vld [vmem:[%s2099_s3 + $0x74] ss:$8 sps:$4 sm:$0xff] (!%p244_p9)   ;;  %v1466_v23 = vld [vmem:[%s2099_s3 + $0x70] ss:$8 sps:$4 sm:$0xff] (!%p244_p9)  }
  0x17   : > { %v1471_v24 = vld [vmem:[%s2099_s3 + $0x84] ss:$8 sps:$4 sm:$0xff] (!%p244_p9)   ;;  %v1469_v25 = vld [vmem:[%s2099_s3 + $0x80] ss:$8 sps:$4 sm:$0xff] (!%p244_p9)   ;;  %v1474_v26 = vld [vmem:[%s2099_s3 + $0x94] ss:$8 sps:$4 sm:$0xff] (!%p244_p9)  }
  0x18   : > { %s276_s21 = scalar_select %p275_p10, %s1650_s16, 31  ;;  %1377 = vmatpush1.bf16.msra.mxu1 %v1448_v7  ;;  %v1472_v28 = vld [vmem:[%s2099_s3 + $0x90] ss:$8 sps:$4 sm:$0xff]   ;;  %v1477_v29 = vld [vmem:[%s2099_s3 + $0xa4] ss:$8 sps:$4 sm:$0xff]  }
  0x19   : > { %1362 = vmatprep.subr.bf16.mxu1 %v1453_v9  ;;  %v1475_v30 = vld [vmem:[%s2099_s3 + $0xa0] ss:$8 sps:$4 sm:$0xff]   ;;  %v1480_v31 = vld [vmem:[%s2099_s3 + $0xb4] ss:$8 sps:$4 sm:$0xff]   ;;  %v1478_v33 = vld [vmem:[%s2099_s3 + $0xb0] ss:$8 sps:$4 sm:$0xff]  }
  0x1a   : > { %s1306_s6 = sshll.u32 %s276_s21, 2  ;;  %v1483_v34 = vld [vmem:[%s2099_s3 + $0xc4] ss:$8 sps:$4 sm:$0xff]   ;;  %v1481_v35 = vld [vmem:[%s2099_s3 + $0xc0] ss:$8 sps:$4 sm:$0xff]   ;;  %v898_v46 = vld [vmem:[%s2101_s5 + $0x10] sm:$0xff] }
  0x1b   : > { %s1672_s10 = scalar_lea.vmem %s2096_s0, %s1306_s6  ;;  %v1486_v36 = vld [vmem:[%s2099_s3 + $0xd4] ss:$8 sps:$4 sm:$0xff]   ;;  %v1484_v38 = vld [vmem:[%s2099_s3 + $0xd0] ss:$8 sps:$4 sm:$0xff]   ;;  %v1489_v40 = vld [vmem:[%s2099_s3 + $0xe4] ss:$8 sps:$4 sm:$0xff]   ;;  %1005 = vperm.xlu1 %1433, %v898_v46  }
  0x1c   : > { %v1437_v8 = vld [vmem:[%s1672_s10] sm:$0xff]   ;;  %v1438_v12 = vld [vmem:[%s1672_s10 + $0x8] sm:$0xff]   ;;  %1378 = vmatpush1.bf16.msra.mxu1 %v1451_v10  ;;  %v1439_v17 = vld [vmem:[%s1672_s10 + $0x10] sm:$0xff]   ;;  %s272_s24 = sand.u32 1, %s1547_s27   ;;  %s1558_s17 = smov [#allocation3]  }
  0x1d   : > { %1317 = vmatmul.mubr.msk.bf16.vlgmr.msra.gmra.mrb[0].mxu0 %vm361_vm0, %v1437_v8  ;;  %1363 = vmatprep.subr.bf16.mxu1 %v1456_v11  ;;  %v1440_v22 = vld [vmem:[%s1672_s10 + $0x18] sm:$0xff]   ;;  %v1441_v27 = vld [vmem:[%s1672_s10 + $0x20] sm:$0xff]   ;;  %v1442_v32 = vld [vmem:[%s1672_s10 + $0x28] sm:$0xff]   ;;  %s273_s25 = scalar_lea.vmem [#allocation3], %s272_s24  ;;  %s1234_s14 = scalar_lea.sflag [#allocation4], %s272_s24 }
  0x1e   : > { %428 = vmatprep.mubr.bf16.mxu0 %v1557_v3  ;;  %752 = vmatpush1.bf16.msra.mxu0 %v1445_v5  ;;  %v1443_v37 = vld [vmem:[%s1672_s10 + $0x30] sm:$0xff]   ;;  %v1444_v39 = vld [vmem:[%s1672_s10 + $0x38] sm:$0xff]   ;;  %v1487_v41 = vld [vmem:[%s2099_s3 + $0xe0] ss:$8 sps:$4 sm:$0xff]   ;;  %s1246_s6 = sshll.u32 %s273_s25, 4  ;;  %s2054_s10 = scalar_lea.hbm %s2103_s7, %s1650_s16  ;;  %s2056_s6 = int_to_ptr.vmem [resolvable:$true] %s1246_s6 }
  0x1f   : > { %753 = vmatprep.subr.bf16.mxu0 %v1450_v6  ;;  %v1492_v42 = vld [vmem:[%s2099_s3 + $0xf4] ss:$8 sps:$4 sm:$0xff]   ;;  %v1490_v43 = vld [vmem:[%s2099_s3 + $0xf0] ss:$8 sps:$4 sm:$0xff]   ;;  %v896_v45 = vld [vmem:[%s2101_s5] sm:$0xff]  ;;  %s1493_s15 = scalar_lea.vmem %s2056_s6, 16 }
  0x20   : > { %1379 = vmatpush1.bf16.msra.mxu1 %v1454_v13  ;;  %995 = vperm.xlu0 %1432, %v896_v45   ;;  %v901_v47 = vld [vmem:[%s2101_s5 + $0x28] sm:$0xff]  ;;  %v899_v48 = vld [vmem:[%s2101_s5 + $0x18] sm:$0xff]  ;;  %v900_v50 = vld [vmem:[%s2101_s5 + $0x20] sm:$0xff]  ;;  %p1494_p11 = scmp.ne.s32.totalorder %s2056_s6, %s1493_s15  ;;  %s1497_s18 = sshll.u32 %s1558_s17, 4  ;;  %s1498_s18 = int_to_ptr.vmem [resolvable:$false] %s1497_s18 }
  0x21   : > { %1364 = vmatprep.subr.bf16.mxu1 %v1459_v14  ;;  %v903_v49 = vld [vmem:[%s2101_s5 + $0x38] sm:$0xff]  ;;  %1010 = vperm.xlu1 %1433, %v899_v48   ;;  %v905_v51 = vld [vmem:[%s2101_s5 + $0x48] sm:$0xff]  ;;  %v902_v52 = vld [vmem:[%s2101_s5 + $0x30] sm:$0xff]  ;;  %s1499_s19 = scalar_lea.vmem %s1498_s18, 32  ;;  %p1500_p0 = scmp.lt.s32.totalorder %s2056_s6, %s1498_s18 }
  0x22   : > { %754 = vmatpush1.bf16.msra.mxu0 %v1448_v7  ;;  %v907_v53 = vld [vmem:[%s2101_s5 + $0x58] sm:$0xff]  ;;  %v904_v54 = vld [vmem:[%s2101_s5 + $0x40] sm:$0xff]  ;;  %v909_v55 = vld [vmem:[%s2101_s5 + $0x68] sm:$0xff]  ;;  %v1862_v7 = vshrl.u32 %v301_v4, 7  ;;  %p1495_p12 = pnand %p1494_p11, %p1637_p5  ;;  %p1501_p1 = scmp.lt.s32.totalorder %s1499_s19, %s1493_s15 }
  0x23   : > { %755 = vmatprep.subr.bf16.mxu0 %v1453_v9  ;;  %v906_v56 = vld [vmem:[%s2101_s5 + $0x50] sm:$0xff]  ;;  %v911_v57 = vld [vmem:[%s2101_s5 + $0x78] sm:$0xff]  ;;  %v908_v58 = vld [vmem:[%s2101_s5 + $0x60] sm:$0xff] }
  0x24   : > { %1380 = vmatpush1.bf16.msra.mxu1 %v1457_v15  ;;  %1020 = vperm.xlu0 %1432, %v901_v47   ;;  %v913_v59 = vld [vmem:[%s2101_s5 + $0x88] sm:$0xff]  ;;  %v910_v60 = vld [vmem:[%s2101_s5 + $0x70] sm:$0xff]  ;;  %v915_v61 = vld [vmem:[%s2101_s5 + $0x98] sm:$0xff]  ;;  %p1496_p13 = pneg %p1495_p12  ;;  %p1502_p2 = por %p1501_p1, %p1500_p0 }
  0x25   : > { %1318 = vmatmul.mubr.msk.bf16.gmra.mrb[4].mxu0 %vm361_vm0, %v1438_v12  ;;  %1365 = vmatprep.subr.bf16.mxu1 %v1462_v16  ;;  %v912_v62 = vld [vmem:[%s2101_s5 + $0x80] sm:$0xff]  ;;  %v917_v63 = vld [vmem:[%s2101_s5 + $0xa8] sm:$0xff]  ;;  %v914_v0 = vld [vmem:[%s2101_s5 + $0x90] sm:$0xff] }
  0x26   : > { %438 = vmatprep.mubr.bf16.mxu0 %v1557_v3  ;;  %756 = vmatpush1.bf16.msra.mxu0 %v1451_v10  ;;  %v919_v1 = vld [vmem:[%s2101_s5 + $0xb8] sm:$0xff]  ;;  %v916_v2 = vld [vmem:[%s2101_s5 + $0xa0] sm:$0xff]  ;;  %v918_v5 = vld [vmem:[%s2101_s5 + $0xb0] sm:$0xff]  ;;  %v1871_v10 = vsub.s32 0, %v1862_v7  ;;  %p1503_p3 = pnand %p1502_p2, %p1496_p13 }
  0x27   : > { %757 = vmatprep.subr.bf16.mxu0 %v1456_v11  ;;  %1015 = vperm.xlu1 %1433, %v900_v50   ;;  %v923_v6 = vld [vmem:[%s2101_s5 + $0xd8] sm:$0xff]  ;;  %v920_v8 = vld [vmem:[%s2101_s5 + $0xc0] sm:$0xff]  ;;  %v925_v9 = vld [vmem:[%s2101_s5 + $0xe8] sm:$0xff] }
  0x28   : > { %1381 = vmatpush1.bf16.msra.mxu1 %v1460_v18  ;;  %1030 = vperm.xlu0 %1432, %v903_v49   ;;  %v922_v11 = vld [vmem:[%s2101_s5 + $0xd0] sm:$0xff]  ;;  %v299_v12 = vld [vmem:[%s2098_s2] sm:$0x3] }
  0x29   : > { %1366 = vmatprep.subr.bf16.mxu1 %v1465_v19 }
  0x2a   : > { %758 = vmatpush1.bf16.msra.mxu0 %v1454_v13  ;;  %v307_v13 = vsub.s32 1, %v1862_v7 }
  0x2b   : > { %759 = vmatprep.subr.bf16.mxu0 %v1459_v14  ;;  %1025 = vperm.xlu1 %1433, %v902_v52   ;;  %v1881_v14 = vrot.slane %v299_v12, %v1871_v10 }
  0x2c   : > { %1382 = vmatpush1.bf16.msra.mxu1 %v1463_v20  ;;  %1040 = vperm.xlu0 %1432, %v905_v51  }
  0x2d   : > { %1319 = vmatmul.mubr.msk.bf16.gmra.mrb[8].mxu0 %vm361_vm0, %v1439_v17  ;;  %1367 = vmatprep.subr.bf16.mxu1 %v1468_v21 }
  0x2e   : > { %448 = vmatprep.mubr.bf16.mxu0 %v1557_v3  ;;  %760 = vmatpush1.bf16.msra.mxu0 %v1457_v15  ;;  %v924_v15 = vld [vmem:[%s2101_s5 + $0xe0] sm:$0xff] }
  0x2f   : > { %761 = vmatprep.subr.bf16.mxu0 %v1462_v16  ;;  %1035 = vperm.xlu1 %1433, %v904_v54   ;;  %v1888_v16 = vrot.slane %v299_v12, %v307_v13 }
  0x30   : > { %1383 = vmatpush1.bf16.msra.mxu1 %v1466_v23  ;;  %1050 = vperm.xlu0 %1432, %v907_v53  }
  0x31   : > { %1368 = vmatprep.subr.bf16.mxu1 %v1471_v24 }
  0x32   : > { %762 = vmatpush1.bf16.msra.mxu0 %v1460_v18 }
  0x33   : > { %763 = vmatprep.subr.bf16.mxu0 %v1465_v19  ;;  %1045 = vperm.xlu1 %1433, %v906_v56  }
  0x34   : > { %1384 = vmatpush1.bf16.msra.mxu1 %v1469_v25  ;;  %1060 = vperm.xlu0 %1432, %v909_v55  }
  0x35   : > { %1320 = vmatmul.mubr.msk.bf16.gmra.mrb[12].mxu0 %vm361_vm0, %v1440_v22  ;;  %1369 = vmatprep.subr.bf16.mxu1 %v1474_v26 }
  0x36   : > { %458 = vmatprep.mubr.bf16.mxu0 %v1557_v3  ;;  %764 = vmatpush1.bf16.msra.mxu0 %v1463_v20  ;;  %v926_v20 = vld [vmem:[%s2101_s5 + $0xf0] sm:$0xff] }
  0x37   : > { %765 = vmatprep.subr.bf16.mxu0 %v1468_v21  ;;  %1055 = vperm.xlu1 %1433, %v908_v58  }
  0x38   : > { %1385 = vmatpush1.bf16.msra.mxu1 %v1472_v28  ;;  %1070 = vperm.xlu0 %1432, %v911_v57  }
  0x39   : > { %1370 = vmatprep.subr.bf16.mxu1 %v1477_v29 }
  0x3a   : > { %766 = vmatpush1.bf16.msra.mxu0 %v1466_v23 }
  0x3b   : > { %767 = vmatprep.subr.bf16.mxu0 %v1471_v24  ;;  %1065 = vperm.xlu1 %1433, %v910_v60  }
  0x3c   : > { %1386 = vmatpush1.bf16.msra.mxu1 %v1475_v30  ;;  %1080 = vperm.xlu0 %1432, %v913_v59  }
  0x3d   : > { %1321 = vmatmul.mubr.msk.bf16.gmra.mrb[16].mxu0 %vm361_vm0, %v1441_v27  ;;  %1371 = vmatprep.subr.bf16.mxu1 %v1480_v31 }
  0x3e   : > { %468 = vmatprep.mubr.bf16.mxu0 %v1557_v3  ;;  %768 = vmatpush1.bf16.msra.mxu0 %v1469_v25 }
  0x3f   : > { %769 = vmatprep.subr.bf16.mxu0 %v1474_v26  ;;  %1075 = vperm.xlu1 %1433, %v912_v62  }
  0x40   : > { %1387 = vmatpush1.bf16.msra.mxu1 %v1478_v33  ;;  %1090 = vperm.xlu0 %1432, %v915_v61  }
  0x41   : > { %1372 = vmatprep.subr.bf16.mxu1 %v1483_v34 }
  0x42   : > { %770 = vmatpush1.bf16.msra.mxu0 %v1472_v28 }
  0x43   : > { %771 = vmatprep.subr.bf16.mxu0 %v1477_v29  ;;  %1085 = vperm.xlu1 %1433, %v914_v0  }
  0x44   : > { %1388 = vmatpush1.bf16.msra.mxu1 %v1481_v35  ;;  %1100 = vperm.xlu0 %1432, %v917_v63  }
  0x45   : > { %1322 = vmatmul.mubr.msk.bf16.gmra.mrb[20].mxu0 %vm361_vm0, %v1442_v32  ;;  %1373 = vmatprep.subr.bf16.mxu1 %v1486_v36 }
  0x46   : > { %478 = vmatprep.mubr.bf16.mxu0 %v1557_v3  ;;  %772 = vmatpush1.bf16.msra.mxu0 %v1475_v30 }
  0x47   : > { %773 = vmatprep.subr.bf16.mxu0 %v1480_v31  ;;  %1095 = vperm.xlu1 %1433, %v916_v2  }
  0x48   : > { %1389 = vmatpush1.bf16.msra.mxu1 %v1484_v38  ;;  %1110 = vperm.xlu0 %1432, %v919_v1  }
  0x49   : > { %1374 = vmatprep.subr.bf16.mxu1 %v1489_v40 }
  0x4a   : > { %774 = vmatpush1.bf16.msra.mxu0 %v1478_v33 }
  0x4b   : > { %775 = vmatprep.subr.bf16.mxu0 %v1483_v34  ;;  %1105 = vperm.xlu1 %1433, %v918_v5  }
  0x4c   : > { %1390 = vmatpush1.bf16.msra.mxu1 %v1487_v41 }
  0x4d   : > { %1323 = vmatmul.mubr.msk.bf16.gmra.mrb[24].mxu0 %vm361_vm0, %v1443_v37  ;;  %1375 = vmatprep.subr.bf16.mxu1 %v1492_v42 }
  0x4e   : > { %488 = vmatprep.mubr.bf16.mxu0 %v1557_v3  ;;  %776 = vmatpush1.bf16.msra.mxu0 %v1481_v35  ;;  %v921_v3 = vld [vmem:[%s2101_s5 + $0xc8] sm:$0xff] }
  0x4f   : > { %777 = vmatprep.subr.bf16.mxu0 %v1486_v36  ;;  %1120 = vperm.xlu0 %1432, %v921_v3  }
  0x50   : > { %1391 = vmatpush1.bf16.msra.mxu1 %v1490_v43  ;;  %1115 = vperm.xlu1 %1433, %v920_v8  }
  0x52   : > { %778 = vmatpush1.bf16.msra.mxu0 %v1484_v38 }
  0x53   : > { %779 = vmatprep.subr.bf16.mxu0 %v1489_v40  ;;  %1130 = vperm.xlu0 %1432, %v923_v6  }
  0x54   : > { %1125 = vperm.xlu1 %1433, %v922_v11  }
  0x55   : > { %1324 = vmatmul.mubr.msk.bf16.gmra.mrb[28].mxu0 %vm361_vm0, %v1444_v39 }
  0x56   : > { %780 = vmatpush1.bf16.msra.mxu0 %v1487_v41 }
  0x57   : > { %781 = vmatprep.subr.bf16.mxu0 %v1492_v42  ;;  %1140 = vperm.xlu0 %1432, %v925_v9  }
  0x58   : > { %1135 = vperm.xlu1 %1433, %v924_v15  }
  0x5a   : > { %782 = vmatpush1.bf16.msra.mxu0 %v1490_v43 }
  0x5c   : > { %1145 = vperm.xlu1 %1433, %v926_v20  }
  0xf0   : > { %v420_v17 = vpop.f32.mrb[0].mxu0 }
  0xf1   : > { %v421_v18 = vadd.f32 %v420_v17, %v1881_v14  ;;  %v422_v19 = vpop.f32.mrb[1].mxu0 }
  0xf2   : > { %v423_v21 = vadd.f32 %v422_v19, %v1888_v16  ;;  %v424_v22 = vpop.f32.mrb[2].mxu0 }
  0xf3   : > { %v425_v23 = vadd.f32 %v424_v22, %v1881_v14  ;;  %v426_v24 = vpop.f32.mrb[3].mxu0  ;;  %v499_v26 = vmax.f32 %v421_v18, 0.0 }
  0xf4   : > { %v427_v25 = vadd.f32 %v426_v24, %v1888_v16  ;;  %v500_v28 = vmax.f32 %v423_v21, 0.0 }
  0xf5   : > { %v501_v27 = vmax.f32 %v425_v23, 0.0 }
  0xf6   : > { %v502_v29 = vmax.f32 %v427_v25, 0.0 }
  0xf7   : > { %v564_v30 = vpack.c.bf16 %v501_v27, %v499_v26 }
  0xf8   : > { %v565_v31 = vpack.c.bf16 %v502_v29, %v500_v28  ;;  %v430_v32 = vpop.f32.mrb[4].mxu0 }
  0xf9   : > { %v431_v33 = vadd.f32 %v430_v32, %v1881_v14  ;;  %v432_v34 = vpop.f32.mrb[5].mxu0 }
  0xfa   : > { %v433_v35 = vadd.f32 %v432_v34, %v1888_v16  ;;  %v434_v36 = vpop.f32.mrb[6].mxu0  ;;  %783 = vmatprep.mubr.bf16.mxu0 %v565_v31 }
  0xfb   : > { %v435_v37 = vadd.f32 %v434_v36, %v1881_v14  ;;  %v436_v38 = vpop.f32.mrb[7].mxu0  ;;  %784 = vmatmul.mubr.bf16.vlgmr.msra.gmra.mrb[32].mxu0 %v564_v30  ;;  %v503_v40 = vmax.f32 %v431_v33, 0.0 }
  0xfc   : > { %v437_v39 = vadd.f32 %v436_v38, %v1888_v16  ;;  %v504_v42 = vmax.f32 %v433_v35, 0.0 }
  0xfd   : > { %v505_v41 = vmax.f32 %v435_v37, 0.0 }
  0xfe   : > { %v506_v43 = vmax.f32 %v437_v39, 0.0 }
  0xff   : > { %v566_v44 = vpack.c.bf16 %v505_v41, %v503_v40 }
 0x100   : > { %v567_v45 = vpack.c.bf16 %v506_v43, %v504_v42  ;;  %v440_v46 = vpop.f32.mrb[8].mxu0 }
 0x101   : > { %v441_v47 = vadd.f32 %v440_v46, %v1881_v14  ;;  %v442_v48 = vpop.f32.mrb[9].mxu0 }
 0x102   : > { %v443_v49 = vadd.f32 %v442_v48, %v1888_v16  ;;  %v444_v50 = vpop.f32.mrb[10].mxu0  ;;  %793 = vmatprep.mubr.bf16.mxu0 %v567_v45 }
 0x103   : > { %v445_v51 = vadd.f32 %v444_v50, %v1881_v14  ;;  %v446_v52 = vpop.f32.mrb[11].mxu0  ;;  %794 = vmatmul.mubr.bf16.gmra.mrb[36].mxu0 %v566_v44  ;;  %v507_v54 = vmax.f32 %v441_v47, 0.0 }
 0x104   : > { %v447_v53 = vadd.f32 %v446_v52, %v1888_v16  ;;  %v508_v56 = vmax.f32 %v443_v49, 0.0 }
 0x105   : > { %v509_v55 = vmax.f32 %v445_v51, 0.0 }
 0x106   : > { %v510_v57 = vmax.f32 %v447_v53, 0.0 }
 0x107   : > { %v568_v58 = vpack.c.bf16 %v509_v55, %v507_v54 }
 0x108   : > { %v569_v59 = vpack.c.bf16 %v510_v57, %v508_v56  ;;  %v450_v60 = vpop.f32.mrb[12].mxu0 }
 0x109   : > { %v451_v61 = vadd.f32 %v450_v60, %v1881_v14  ;;  %v452_v62 = vpop.f32.mrb[13].mxu0 }
 0x10a   : > { %v453_v63 = vadd.f32 %v452_v62, %v1888_v16  ;;  %v454_v0 = vpop.f32.mrb[14].mxu0  ;;  %803 = vmatprep.mubr.bf16.mxu0 %v569_v59 }
 0x10b   : > { %v455_v1 = vadd.f32 %v454_v0, %v1881_v14  ;;  %v456_v2 = vpop.f32.mrb[15].mxu0  ;;  %804 = vmatmul.mubr.bf16.gmra.mrb[40].mxu0 %v568_v58  ;;  %v511_v4 = vmax.f32 %v451_v61, 0.0 }
 0x10c   : > { %v457_v3 = vadd.f32 %v456_v2, %v1888_v16  ;;  %v512_v6 = vmax.f32 %v453_v63, 0.0 }
 0x10d   : > { %v513_v5 = vmax.f32 %v455_v1, 0.0 }
 0x10e   : > { %v514_v8 = vmax.f32 %v457_v3, 0.0 }
 0x10f   : > { %v570_v9 = vpack.c.bf16 %v513_v5, %v511_v4 }
 0x110   : > { %v460_v11 = vpop.f32.mrb[16].mxu0  ;;  %v571_v12 = vpack.c.bf16 %v514_v8, %v512_v6  ;;  %v563_v8 = vld [vmem:[%s2100_s4] sm:$0x3] }
 0x111   : > { %v461_v15 = vadd.f32 %v460_v11, %v1881_v14  ;;  %v462_v17 = vpop.f32.mrb[17].mxu0 }
 0x112   : > { %v463_v18 = vadd.f32 %v462_v17, %v1888_v16  ;;  %v464_v19 = vpop.f32.mrb[18].mxu0  ;;  %813 = vmatprep.mubr.bf16.mxu1 %v571_v12 }
 0x113   : > { %v465_v20 = vadd.f32 %v464_v19, %v1881_v14  ;;  %v466_v21 = vpop.f32.mrb[19].mxu0  ;;  %814 = vmatmul.mubr.bf16.vlgmr.msra.gmra.mrb[0].mxu1 %v570_v9  ;;  %v515_v23 = vmax.f32 %v461_v15, 0.0  ;;  %v1929_v9 = vrot.slane %v563_v8, %v1871_v10 }
 0x114   : > { %v467_v22 = vadd.f32 %v466_v21, %v1888_v16  ;;  %v516_v25 = vmax.f32 %v463_v18, 0.0 }
 0x115   : > { %v517_v24 = vmax.f32 %v465_v20, 0.0 }
 0x116   : > { %v518_v26 = vmax.f32 %v467_v22, 0.0 }
 0x117   : > { %v572_v27 = vpack.c.bf16 %v517_v24, %v515_v23 }
 0x118   : > { %v573_v28 = vpack.c.bf16 %v518_v26, %v516_v25  ;;  %v470_v29 = vpop.f32.mrb[20].mxu0 }
 0x119   : > { %v471_v30 = vadd.f32 %v470_v29, %v1881_v14  ;;  %v472_v31 = vpop.f32.mrb[21].mxu0 }
 0x11a   : > { %v473_v32 = vadd.f32 %v472_v31, %v1888_v16  ;;  %v474_v33 = vpop.f32.mrb[22].mxu0  ;;  %823 = vmatprep.mubr.bf16.mxu1 %v573_v28 }
 0x11b   : > { %v475_v34 = vadd.f32 %v474_v33, %v1881_v14  ;;  %v476_v35 = vpop.f32.mrb[23].mxu0  ;;  %824 = vmatmul.mubr.bf16.gmra.mrb[4].mxu1 %v572_v27  ;;  %v519_v37 = vmax.f32 %v471_v30, 0.0 }
 0x11c   : > { %v477_v36 = vadd.f32 %v476_v35, %v1888_v16  ;;  %v520_v39 = vmax.f32 %v473_v32, 0.0 }
 0x11d   : > { %v521_v38 = vmax.f32 %v475_v34, 0.0 }
 0x11e   : > { %v522_v40 = vmax.f32 %v477_v36, 0.0 }
 0x11f   : > { %v574_v41 = vpack.c.bf16 %v521_v38, %v519_v37 }
 0x120   : > { %v575_v42 = vpack.c.bf16 %v522_v40, %v520_v39  ;;  %v480_v43 = vpop.f32.mrb[24].mxu0 }
 0x121   : > { %v481_v44 = vadd.f32 %v480_v43, %v1881_v14  ;;  %v482_v45 = vpop.f32.mrb[25].mxu0 }
 0x122   : > { %v483_v46 = vadd.f32 %v482_v45, %v1888_v16  ;;  %v484_v47 = vpop.f32.mrb[26].mxu0  ;;  %833 = vmatprep.mubr.bf16.mxu1 %v575_v42 }
 0x123   : > { %v485_v48 = vadd.f32 %v484_v47, %v1881_v14  ;;  %v486_v49 = vpop.f32.mrb[27].mxu0  ;;  %834 = vmatmul.mubr.bf16.gmra.mrb[8].mxu1 %v574_v41  ;;  %v523_v51 = vmax.f32 %v481_v44, 0.0 }
 0x124   : > { %v487_v50 = vadd.f32 %v486_v49, %v1888_v16  ;;  %v524_v53 = vmax.f32 %v483_v46, 0.0 }
 0x125   : > { %v525_v52 = vmax.f32 %v485_v48, 0.0 }
 0x126   : > { %v526_v54 = vmax.f32 %v487_v50, 0.0 }
 0x127   : > { %v576_v55 = vpack.c.bf16 %v525_v52, %v523_v51 }
 0x128   : > { %v577_v56 = vpack.c.bf16 %v526_v54, %v524_v53  ;;  %v490_v57 = vpop.f32.mrb[28].mxu0 }
 0x129   : > { %v491_v58 = vadd.f32 %v490_v57, %v1881_v14  ;;  %v492_v59 = vpop.f32.mrb[29].mxu0 }
 0x12a   : > { %v493_v60 = vadd.f32 %v492_v59, %v1888_v16  ;;  %v494_v61 = vpop.f32.mrb[30].mxu0  ;;  %843 = vmatprep.mubr.bf16.mxu1 %v577_v56 }
 0x12b   : > { %v495_v62 = vadd.f32 %v494_v61, %v1881_v14  ;;  %v496_v63 = vpop.f32.mrb[31].mxu0  ;;  %844 = vmatmul.mubr.bf16.gmra.mrb[12].mxu1 %v576_v55  ;;  %v527_v1 = vmax.f32 %v491_v58, 0.0  ;;  %v1933_v14 = vrot.slane %v563_v8, %v307_v13 }
 0x12c   : > { %v497_v0 = vadd.f32 %v496_v63, %v1888_v16  ;;  %v528_v3 = vmax.f32 %v493_v60, 0.0 }
 0x12d   : > { %v529_v2 = vmax.f32 %v495_v62, 0.0 }
 0x12e   : > { %v530_v4 = vmax.f32 %v497_v0, 0.0 }
 0x12f   : > { %v578_v5 = vpack.c.bf16 %v529_v2, %v527_v1 }
 0x130   : > { %v579_v6 = vpack.c.bf16 %v530_v4, %v528_v3 }
 0x132   : > { %853 = vmatprep.mubr.bf16.mxu1 %v579_v6 }
 0x133   : > { %854 = vmatmul.mubr.bf16.gmra.mrb[16].mxu1 %v578_v5 }
 0x1ce   : > { %v785_v16 = vpop.f32.mrb[32].mxu0 }
 0x1cf   : > { %v786_v11 = vadd.f32 %v785_v16, %v1929_v9  ;;  %v787_v12 = vpop.f32.mrb[33].mxu0  ;;  %v1955_v16 = vpop.permute.xlu1 %1000 }
 0x1d0   : > { %v788_v15 = vadd.f32 %v787_v12, %v1933_v14  ;;  %v789_v17 = vpop.f32.mrb[34].mxu0 }
 0x1d1   : > { %v864_v18 = vmax.f32 %v786_v11, 0.0  ;;  %v790_v19 = vadd.f32 %v789_v17, %v1929_v9  ;;  %v791_v20 = vpop.f32.mrb[35].mxu0 }
 0x1d2   : > { %v865_v21 = vmax.f32 %v788_v15, 0.0  ;;  %v792_v22 = vadd.f32 %v791_v20, %v1933_v14 }
 0x1d3   : > { %929 = vxpose.xlu0.b32.start [1/16] %v864_v18, 128  ;;  %v866_v23 = vmax.f32 %v790_v19, 0.0 }
 0x1d4   : > { %961 = vxpose.xlu1.b32.start [1/16] %v865_v21, 128  ;;  %v867_v7 = vmax.f32 %v792_v22, 0.0 }
 0x1d6   : > { %v795_v13 = vpop.f32.mrb[36].mxu0 }
 0x1d7   : > { %v796_v24 = vadd.f32 %v795_v13, %v1929_v9  ;;  %v797_v25 = vpop.f32.mrb[37].mxu0  ;;  %930 = vxpose.xlu0.b32.cont [2/16] %v866_v23, 128  ;;  %v1961_v23 = vpop.permute.xlu1 %1005 }
 0x1d8   : > { %v798_v26 = vadd.f32 %v797_v25, %v1933_v14  ;;  %v799_v27 = vpop.f32.mrb[38].mxu0  ;;  %962 = vxpose.xlu1.b32.cont [2/16] %v867_v7, 128 }
 0x1d9   : > { %v868_v28 = vmax.f32 %v796_v24, 0.0  ;;  %v800_v29 = vadd.f32 %v799_v27, %v1929_v9  ;;  %v801_v30 = vpop.f32.mrb[39].mxu0 }
 0x1da   : > { %v869_v31 = vmax.f32 %v798_v26, 0.0  ;;  %v802_v32 = vadd.f32 %v801_v30, %v1933_v14 }
 0x1db   : > { %931 = vxpose.xlu0.b32.cont [3/16] %v868_v28, 128  ;;  %v870_v33 = vmax.f32 %v800_v29, 0.0  ;;  %v1965_v29 = vpop.permute.xlu0 %995 }
 0x1dc   : > { %963 = vxpose.xlu1.b32.cont [3/16] %v869_v31, 128  ;;  %v871_v34 = vmax.f32 %v802_v32, 0.0 }
 0x1de   : > { %v805_v35 = vpop.f32.mrb[40].mxu0 }
 0x1df   : > { %v806_v36 = vadd.f32 %v805_v35, %v1929_v9  ;;  %v807_v37 = vpop.f32.mrb[41].mxu0  ;;  %932 = vxpose.xlu0.b32.cont [4/16] %v870_v33, 128  ;;  %v1969_v35 = vpop.permute.xlu1 %1010 }
 0x1e0   : > { %v808_v38 = vadd.f32 %v807_v37, %v1933_v14  ;;  %v809_v39 = vpop.f32.mrb[42].mxu0  ;;  %964 = vxpose.xlu1.b32.cont [4/16] %v871_v34, 128 }
 0x1e1   : > { %v872_v40 = vmax.f32 %v806_v36, 0.0  ;;  %v810_v41 = vadd.f32 %v809_v39, %v1929_v9  ;;  %v811_v42 = vpop.f32.mrb[43].mxu0  ;;  %v1971_v39 = vpop.permute.xlu0 %1020 }
 0x1e2   : > { %v873_v43 = vmax.f32 %v808_v38, 0.0  ;;  %v812_v44 = vadd.f32 %v811_v42, %v1933_v14 }
 0x1e3   : > { %933 = vxpose.xlu0.b32.cont [5/16] %v872_v40, 128  ;;  %v874_v45 = vmax.f32 %v810_v41, 0.0 }
 0x1e4   : > { %965 = vxpose.xlu1.b32.cont [5/16] %v873_v43, 128  ;;  %v875_v46 = vmax.f32 %v812_v44, 0.0  ;;  %v1975_v44 = vpop.permute.xlu1 %1015 }
 0x1e6   : > { %v815_v47 = vpop.f32.mrb[0].mxu1 }
 0x1e7   : > { %v816_v48 = vadd.f32 %v815_v47, %v1929_v9  ;;  %v817_v49 = vpop.f32.mrb[1].mxu1  ;;  %934 = vxpose.xlu0.b32.cont [6/16] %v874_v45, 128 }
 0x1e8   : > { %v818_v50 = vadd.f32 %v817_v49, %v1933_v14  ;;  %v819_v51 = vpop.f32.mrb[2].mxu1  ;;  %966 = vxpose.xlu1.b32.cont [6/16] %v875_v46, 128 }
 0x1e9   : > { %v876_v52 = vmax.f32 %v816_v48, 0.0  ;;  %v820_v53 = vadd.f32 %v819_v51, %v1929_v9  ;;  %v821_v54 = vpop.f32.mrb[3].mxu1 }
 0x1ea   : > { %v877_v55 = vmax.f32 %v818_v50, 0.0  ;;  %v822_v56 = vadd.f32 %v821_v54, %v1933_v14  ;;  %v1031_v50 = vpop.permute.xlu0 %1030 }
 0x1eb   : > { %935 = vxpose.xlu0.b32.cont [7/16] %v876_v52, 128  ;;  %v878_v57 = vmax.f32 %v820_v53, 0.0  ;;  %v1026_v53 = vpop.permute.xlu1 %1025 }
 0x1ec   : > { %967 = vxpose.xlu1.b32.cont [7/16] %v877_v55, 128  ;;  %v879_v58 = vmax.f32 %v822_v56, 0.0 }
 0x1ee   : > { %v825_v59 = vpop.f32.mrb[4].mxu1  ;;  %v1041_v54 = vpop.permute.xlu0 %1040 }
 0x1ef   : > { %v826_v60 = vadd.f32 %v825_v59, %v1929_v9  ;;  %v827_v61 = vpop.f32.mrb[5].mxu1  ;;  %936 = vxpose.xlu0.b32.cont [8/16] %v878_v57, 128  ;;  %v1036_v55 = vpop.permute.xlu1 %1035 }
 0x1f0   : > { %v828_v62 = vadd.f32 %v827_v61, %v1933_v14  ;;  %v829_v63 = vpop.f32.mrb[6].mxu1  ;;  %968 = vxpose.xlu1.b32.cont [8/16] %v879_v58, 128  ;;  %v928_v61 = vld [vmem:[#allocation2] sm:$0x1] }
 0x1f1   : > { %v880_v0 = vmax.f32 %v826_v60, 0.0  ;;  %v830_v1 = vadd.f32 %v829_v63, %v1929_v9  ;;  %v831_v2 = vpop.f32.mrb[7].mxu1 }
 0x1f2   : > { %v881_v3 = vmax.f32 %v828_v62, 0.0  ;;  %v832_v4 = vadd.f32 %v831_v2, %v1933_v14  ;;  %v1979_v56 = vpop.permute.xlu0 %1050 }
 0x1f3   : > { %937 = vxpose.xlu0.b32.cont [9/16] %v880_v0, 128  ;;  %v882_v5 = vmax.f32 %v830_v1, 0.0  ;;  %v1046_v57 = vpop.permute.xlu1 %1045  ;;  %v927_v1 = vld [vmem:[%s2101_s5 + $0xf8] sm:$0xff] }
 0x1f4   : > { %969 = vxpose.xlu1.b32.cont [9/16] %v881_v3, 128  ;;  %v883_v6 = vmax.f32 %v832_v4, 0.0 }
 0x1f6   : > { %v835_v8 = vpop.f32.mrb[8].mxu1  ;;  %v1981_v58 = vpop.permute.xlu0 %1060 }
 0x1f7   : > { %v836_v11 = vadd.f32 %v835_v8, %v1929_v9  ;;  %v837_v12 = vpop.f32.mrb[9].mxu1  ;;  %938 = vxpose.xlu0.b32.cont [10/16] %v882_v5, 128 }
 0x1f8   : > { %v838_v15 = vadd.f32 %v837_v12, %v1933_v14  ;;  %v839_v17 = vpop.f32.mrb[10].mxu1  ;;  %970 = vxpose.xlu1.b32.cont [10/16] %v883_v6, 128 }
 0x1f9   : > { %v884_v18 = vmax.f32 %v836_v11, 0.0  ;;  %v840_v19 = vadd.f32 %v839_v17, %v1929_v9  ;;  %v841_v20 = vpop.f32.mrb[11].mxu1 }
 0x1fa   : > { %v885_v21 = vmax.f32 %v838_v15, 0.0  ;;  %v842_v22 = vadd.f32 %v841_v20, %v1933_v14  ;;  %v1985_v59 = vpop.permute.xlu0 %1070 }
 0x1fb   : > { %939 = vxpose.xlu0.b32.cont [11/16] %v884_v18, 128  ;;  %v886_v7 = vmax.f32 %v840_v19, 0.0 }
 0x1fc   : > { %971 = vxpose.xlu1.b32.cont [11/16] %v885_v21, 128  ;;  %v887_v13 = vmax.f32 %v842_v22, 0.0 }
 0x1fe   : > { %v845_v24 = vpop.f32.mrb[12].mxu1  ;;  %v1989_v60 = vpop.permute.xlu0 %1080 }
 0x1ff   : > { %v846_v25 = vadd.f32 %v845_v24, %v1929_v9  ;;  %v847_v26 = vpop.f32.mrb[13].mxu1  ;;  %940 = vxpose.xlu0.b32.cont [12/16] %v886_v7, 128 }
 0x200   : > { %v848_v27 = vadd.f32 %v847_v26, %v1933_v14  ;;  %v849_v28 = vpop.f32.mrb[14].mxu1  ;;  %972 = vxpose.xlu1.b32.cont [12/16] %v887_v13, 128 }
 0x201   : > { %v888_v30 = vmax.f32 %v846_v25, 0.0  ;;  %v850_v31 = vadd.f32 %v849_v28, %v1929_v9  ;;  %v851_v32 = vpop.f32.mrb[15].mxu1 }
 0x202   : > { %v889_v33 = vmax.f32 %v848_v27, 0.0  ;;  %v852_v34 = vadd.f32 %v851_v32, %v1933_v14  ;;  %v1993_v63 = vpop.permute.xlu0 %1090 }
 0x203   : > { %941 = vxpose.xlu0.b32.cont [13/16] %v888_v30, 128  ;;  %v890_v36 = vmax.f32 %v850_v31, 0.0 }
 0x204   : > { %973 = vxpose.xlu1.b32.cont [13/16] %v889_v33, 128  ;;  %v891_v37 = vmax.f32 %v852_v34, 0.0 }
 0x206   : > { %v855_v38 = vpop.f32.mrb[16].mxu1  ;;  %v2000_v2 = vpop.permute.xlu0 %1100 }
 0x207   : > { %v856_v40 = vadd.f32 %v855_v38, %v1929_v9  ;;  %v857_v41 = vpop.f32.mrb[17].mxu1  ;;  %942 = vxpose.xlu0.b32.cont [14/16] %v890_v36, 128 }
 0x208   : > { %v858_v42 = vadd.f32 %v857_v41, %v1933_v14  ;;  %v859_v43 = vpop.f32.mrb[18].mxu1  ;;  %974 = vxpose.xlu1.b32.cont [14/16] %v891_v37, 128 }
 0x209   : > { %v892_v45 = vmax.f32 %v856_v40, 0.0  ;;  %v860_v46 = vadd.f32 %v859_v43, %v1929_v9  ;;  %v861_v47 = vpop.f32.mrb[19].mxu1  ;;  %v1983_v9 = vpop.permute.xlu1 %1055 }
 0x20a   : > { %v893_v48 = vmax.f32 %v858_v42, 0.0  ;;  %v862_v49 = vadd.f32 %v861_v47, %v1933_v14  ;;  %v2004_v4 = vpop.permute.xlu0 %1110 }
 0x20b   : > { %943 = vxpose.xlu0.b32.cont [15/16] %v892_v45, 128  ;;  %v894_v51 = vmax.f32 %v860_v46, 0.0 }
 0x20c   : > { %975 = vxpose.xlu1.b32.cont [15/16] %v893_v48, 128  ;;  %v895_v52 = vmax.f32 %v862_v49, 0.0 }
 0x20d   : > { %v1987_v14 = vpop.permute.xlu1 %1065 }
 0x20e   : > { %v2008_v6 = vpop.permute.xlu0 %1120 }
 0x20f   : > { %944 = vxpose.xlu0.b32.end [16/16] %v894_v51, 128 }
 0x210   : > { %976 = vxpose.xlu1.b32.end [16/16] %v895_v52, 128 }
 0x211   : > { %v1991_v62 = vpop.permute.xlu1 %1075 }
 0x212   : > { %v2012_v11 = vpop.permute.xlu0 %1130 }
 0x215   : > { %v1995_v0 = vpop.permute.xlu1 %1085 }
 0x216   : > { %v2016_v15 = vpop.permute.xlu0 %1140 }
 0x219   : > { %v2002_v3 = vpop.permute.xlu1 %1095 }
 0x21d   : > { %v2006_v5 = vpop.permute.xlu1 %1105 }
 0x221   : > { %v2010_v8 = vpop.permute.xlu1 %1115 }
 0x225   : > { %v2014_v12 = vpop.permute.xlu1 %1125 }
 0x229   : > { %v2018_v17 = vpop.permute.xlu1 %1135 }
 0x22d   : > { %v2020_v19 = vpop.permute.xlu1 %1145 }
 0x22e   : > { %1224 = vperm.xlu1 %1433, %v928_v61  }
 0x238   : > { %1150 = vperm.xlu0 %1432, %v927_v1  }
 0x253   : > { %v945_v18 = vpop.trf.xlu0 }
 0x254   : > { %v977_v22 = vpop.trf.xlu1  ;;  %v1153_v13 = vmul.f32 %v1965_v29, %v945_v18 }
 0x257   : > { %v946_v20 = vpop.trf.xlu0 }
 0x258   : > { %v1154_v21 = vmul.f32 %v1955_v16, %v946_v20  ;;  %v978_v30 = vpop.trf.xlu1 }
 0x25a   : > { %v1185_v25 = vadd.f32 %v1154_v21, %v1153_v13 }
 0x25b   : > { %v947_v7 = vpop.trf.xlu0 }
 0x25c   : > { %v1155_v24 = vmul.f32 %v1961_v23, %v947_v7  ;;  %v979_v33 = vpop.trf.xlu1 }
 0x25e   : > { %v1186_v27 = vadd.f32 %v1185_v25, %v1155_v24 }
 0x25f   : > { %v948_v26 = vpop.trf.xlu0 }
 0x260   : > { %v1156_v28 = vmul.f32 %v1969_v35, %v948_v26  ;;  %v980_v37 = vpop.trf.xlu1 }
 0x262   : > { %v1187_v31 = vadd.f32 %v1186_v27, %v1156_v28 }
 0x263   : > { %v949_v32 = vpop.trf.xlu0 }
 0x264   : > { %v981_v16 = vpop.trf.xlu1  ;;  %v1157_v29 = vmul.f32 %v1975_v44, %v949_v32 }
 0x266   : > { %v1188_v45 = vadd.f32 %v1187_v31, %v1157_v29  ;;  %v1172_v29 = vmul.f32 %v1993_v63, %v980_v37 }
 0x267   : > { %v950_v34 = vpop.trf.xlu0 }
 0x268   : > { %v982_v42 = vpop.trf.xlu1  ;;  %v1158_v23 = vmul.f32 %v1971_v39, %v950_v34 }
 0x26a   : > { %v1189_v35 = vadd.f32 %v1188_v45, %v1158_v23  ;;  %v1174_v45 = vmul.f32 %v2000_v2, %v982_v42 }
 0x26b   : > { %v951_v36 = vpop.trf.xlu0 }
 0x26c   : > { %v1159_v46 = vmul.f32 %v1026_v53, %v951_v36  ;;  %v983_v48 = vpop.trf.xlu1 }
 0x26e   : > { %v1190_v51 = vadd.f32 %v1189_v35, %v1159_v46 }
 0x26f   : > { %v952_v38 = vpop.trf.xlu0 }
 0x270   : > { %v1160_v47 = vmul.f32 %v1031_v50, %v952_v38  ;;  %v984_v7 = vpop.trf.xlu1  ;;  %v1170_v38 = vmul.f32 %v1989_v60, %v978_v30 }
 0x271   : > { %v1176_v60 = vmul.f32 %v2004_v4, %v984_v7 }
 0x272   : > { %v1191_v61 = vadd.f32 %v1190_v51, %v1160_v47 }
 0x273   : > { %v953_v40 = vpop.trf.xlu0 }
 0x274   : > { %v1161_v52 = vmul.f32 %v1036_v55, %v953_v40  ;;  %v985_v26 = vpop.trf.xlu1  ;;  %v1171_v40 = vmul.f32 %v1995_v0, %v979_v33 }
 0x275   : > { %v1177_v0 = vmul.f32 %v2010_v8, %v985_v26 }
 0x276   : > { %v1192_v20 = vadd.f32 %v1191_v61, %v1161_v52 }
 0x277   : > { %v954_v41 = vpop.trf.xlu0 }
 0x278   : > { %v1162_v1 = vmul.f32 %v1041_v54, %v954_v41  ;;  %v986_v34 = vpop.trf.xlu1 }
 0x279   : > { %v1178_v63 = vmul.f32 %v2008_v6, %v986_v34 }
 0x27a   : > { %v1193_v13 = vadd.f32 %v1192_v20, %v1162_v1 }
 0x27b   : > { %v955_v43 = vpop.trf.xlu0 }
 0x27c   : > { %v1163_v21 = vmul.f32 %v1046_v57, %v955_v43  ;;  %v987_v41 = vpop.trf.xlu1 }
 0x27e   : > { %v1194_v39 = vadd.f32 %v1193_v13, %v1163_v21 }
 0x27f   : > { %v956_v49 = vpop.trf.xlu0 }
 0x280   : > { %v1164_v44 = vmul.f32 %v1979_v56, %v956_v49  ;;  %v1169_v56 = vmul.f32 %v1991_v62, %v977_v22  ;;  %v988_v46 = vpop.trf.xlu1  ;;  %v1175_v62 = vmul.f32 %v2006_v5, %v983_v48 }
 0x281   : > { %v1180_v2 = vmul.f32 %v2012_v11, %v988_v46 }
 0x282   : > { %v1195_v53 = vadd.f32 %v1194_v39, %v1164_v44 }
 0x283   : > { %v957_v18 = vpop.trf.xlu0 }
 0x284   : > { %v1165_v25 = vmul.f32 %v1983_v9, %v957_v18  ;;  %v989_v35 = vpop.trf.xlu1 }
 0x285   : > { %v1181_v5 = vmul.f32 %v2018_v17, %v989_v35 }
 0x286   : > { %v1196_v28 = vadd.f32 %v1195_v53, %v1165_v25 }
 0x287   : > { %v958_v24 = vpop.trf.xlu0 }
 0x288   : > { %v1166_v50 = vmul.f32 %v1981_v58, %v958_v24  ;;  %v990_v47 = vpop.trf.xlu1 }
 0x289   : > { %v1182_v4 = vmul.f32 %v2016_v15, %v990_v47 }
 0x28a   : > { %v1197_v54 = vadd.f32 %v1196_v28, %v1166_v50 }
 0x28b   : > { %v959_v27 = vpop.trf.xlu0 }
 0x28c   : > { %v1167_v55 = vmul.f32 %v1987_v14, %v959_v27  ;;  %v1173_v14 = vmul.f32 %v2002_v3, %v981_v16  ;;  %v1179_v3 = vmul.f32 %v2014_v12, %v987_v41  ;;  %v991_v51 = vpop.trf.xlu1 }
 0x28d   : > { %v1183_v52 = vmul.f32 %v2020_v19, %v991_v51 }
 0x28e   : > { %v1198_v32 = vadd.f32 %v1197_v54, %v1167_v55 }
 0x28f   : > { %v960_v31 = vpop.trf.xlu0 }
 0x290   : > { %v1168_v57 = vmul.f32 %v1985_v59, %v960_v31  ;;  %v992_v6 = vpop.trf.xlu1 }
 0x292   : > { %v1199_v36 = vadd.f32 %v1198_v32, %v1168_v57 }
 0x294   : > { %v1200_v9 = vadd.f32 %v1199_v36, %v1169_v56 }
 0x296   : > { %v1201_v58 = vadd.f32 %v1200_v9, %v1170_v38 }
 0x298   : > { %v1202_v23 = vadd.f32 %v1201_v58, %v1171_v40 }
 0x29a   : > { %v1203_v43 = vadd.f32 %v1202_v23, %v1172_v29 }
 0x29c   : > { %v1204_v59 = vadd.f32 %v1203_v43, %v1173_v14 }
 0x29e   : > { %v1205_v22 = vadd.f32 %v1204_v59, %v1174_v45 }
 0x2a0   : > { %v1206_v30 = vadd.f32 %v1205_v22, %v1175_v62 }
 0x2a2   : > { %v1207_v33 = vadd.f32 %v1206_v30, %v1176_v60 }
 0x2a4   : > { %v1208_v37 = vadd.f32 %v1207_v33, %v1177_v0 }
 0x2a6   : > { %v1209_v16 = vadd.f32 %v1208_v37, %v1178_v63 }
 0x2a8   : > { %v1210_v42 = vadd.f32 %v1209_v16, %v1179_v3 }
 0x2aa   : > { %v1211_v48 = vadd.f32 %v1210_v42, %v1180_v2 }
 0x2ac   : > { %v1212_v49 = vadd.f32 %v1211_v48, %v1181_v5 }
 0x2ad   : > { %v1225_v7 = vpop.permute.xlu1 %1224 }
 0x2ae   : > { %v1213_v8 = vadd.f32 %v1212_v49, %v1182_v4  ;;  %v1230_v15 = vrot.slane %v1225_v7, %v1871_v10 }
 0x2b0   : > { %v1214_v12 = vadd.f32 %v1213_v8, %v1183_v52 }
 0x2b7   : > { %v1151_v61 = vpop.permute.xlu0 %1150 }
 0x2b8   : > { %v1184_v1 = vmul.f32 %v1151_v61, %v992_v6 }
 0x2ba   : > { %v1215_v18 = vadd.f32 %v1214_v12, %v1184_v1 }
 0x2bc   : > { %v1216_v11 = vrot.slane %v1215_v18, 4 }
 0x2be   : > { %v1217_v20 = vadd.f32 %v1216_v11, %v1215_v18 }
 0x2c0   : > { %v1218_v21 = vrot.slane %v1217_v20, 2 }
 0x2c2   : > { %v1219_v17 = vadd.f32 %v1218_v21, %v1217_v20 }
 0x2c4   : > { %v1220_v13 = vrot.slane %v1219_v17, 1 }
 0x2c6   : > { %v1221_v44 = vadd.f32 %v1220_v13, %v1219_v17 }
 0x2c8   : > { %v1231_v19 = vadd.f32 %v1230_v15, %v1221_v44 }
 0x2ca   : > { %1232 = vst [vmem:[%s273_s25] sm:$0x1] %v1231_v19 }
 0x2cb   : > { %1506 = shalt.err (!%p1503_p3)
}
 0x2cc   : > { %s1507_s16 = scalar_lea.hbm %s2054_s10, 16  ;;  %s1511_s22 = scalar_lea.hbm %s2103_s7, 32 }
 0x2cd   : > { %p1508_p4 = scmp.ne.s32.totalorder %s2054_s10, %s1507_s16  ;;  %p1512_p9 = scmp.lt.u32.totalorder %s2054_s10, %s2103_s7 }
 0x2ce   : > { %p1513_p10 = scmp.lt.u32.totalorder %s1511_s22, %s1507_s16  ;;  %p1515_p12 = scmp.lt.u32.totalorder %s1507_s16, %s2054_s10 }
 0x2cf   : > { %p1509_p7 = pnand %p1508_p4, %p1637_p5 }
 0x2d0   : > { %p1514_p11 = por %p1513_p10, %p1512_p9 }
 0x2d1   : > { %p1510_p8 = pneg %p1509_p7 }
 0x2d2   : > { %p1516_p13 = por %p1515_p12, %p1514_p11 }
 0x2d4   : > { %p1517_p0 = pnand %p1516_p13, %p1510_p8 }
 0x2d6   : > { %1520 = shalt.err (!%p1517_p0)
}
 0x2d7   : > { %1392 = dma.vmem_to_hbm [thread:$0]  (%p1637_p5), %s2056_s6, 16, %s2054_s10, %s1234_s14  }
 0x2d8 PF: > { %p1398_p1 = scmp.ge.s32.totalorder %s1555_s29, 2  ;;  %s1258_s25 = sand.u32 1, %s1543_s26  }
 0x2d9   : > { %s1259_s30 = scalar_lea.sflag [#allocation4], %s1258_s25 }
 0x2da   : > { %p1395_p2 = pnand %p1398_p1, %p1641_p6 }
 0x2dc   : > { %1538 = dma.done.wait (!%p1395_p2), %s1259_s30, 16  }
 0x2dd   : > { %1540 = vsyncadd (!%p1395_p2), %s1259_s30, 4294967280  ;;  %p19_p3 = scmp.ge.s32.totalorder %s1625_s8, 4   ;;  %s2106_s26 = smov %s1547_s27 }
 0x2de   : > { %s2107_s27 = smov %s1551_s28  ;;  %s2108_s28 = smov %s1635_s11 }
 0x2df   : > { %s2109_s29 = smov %s1625_s8  ;;  %21 = sbr.rel (!%p19_p3) target bundleno = 6 (0x6), region = 83 }
 0x2e6   :  { %1263 = vsyncpa [#allocation4], 1 }
 0x2e7   :  { %1265 = vsyncpa [#allocation4 + $0x1], 1 }

</bundles_post_ra>
